<compile_context>
chip_gen: v5e
topology: v5e:2x2
jax: 0.10.0
libtpu: 0.0.40
codegen_flags: <defaults>
</compile_context>

<pallas_src>
import jax
import jax.numpy as jnp
from jax.experimental import pallas as pl
from jax.experimental.pallas import tpu as pltpu


def mlp_kernel(x_ref, w1_ref, b1_ref, w2_ref, b2_ref, o_ref):
    # hidden = relu(x @ W1 + b1)   (f32 accumulation on the MXU)
    h = jnp.dot(x_ref[...], w1_ref[...], preferred_element_type=jnp.float32)
    h = h + b1_ref[...]
    h = jnp.maximum(h, 0.0)
    # out = h @ W2 + b2
    o = jnp.dot(h, w2_ref[...], preferred_element_type=jnp.float32)
    o = o + b2_ref[...]
    o_ref[...] = o.astype(o_ref.dtype)


def simple_classifier(x, w1, b1, w2, b2, *, max_block_b=512):
    """x: (B, input_dim) f32; w1: (input_dim, 16); b1: (1, 16);
    w2: (16, num_classes); b2: (1, num_classes)."""
    B, D = x.shape
    H = w1.shape[1]
    C = w2.shape[1]

    # Batch tile: multiple of 8 (f32 sublane), <= max_block_b, and no larger
    # than the sublane-rounded batch itself. 512 amortizes the ~0.35us/step
    # grid overhead while keeping the double-buffered x tile tiny relative to
    # the v7x 64 MiB VMEM budget.
    TB = min(max_block_b, pl.cdiv(B, 8) * 8)

    # Pad the batch up to a multiple of TB so every grid step sees a full,
    # (8,128)-legal tile; padded rows are sliced off before returning.
    Bp = pl.cdiv(B, TB) * TB
    x_in = jnp.pad(x, ((0, Bp - B), (0, 0))) if Bp != B else x

    out = pl.pallas_call(
        mlp_kernel,
        out_shape=jax.ShapeDtypeStruct((Bp, C), jnp.float32),
        grid=(Bp // TB,),
        in_specs=[
            pl.BlockSpec((TB, D), lambda i: (i, 0)),   # x: tiled over batch
            pl.BlockSpec((D, H), lambda i: (0, 0)),    # W1: VMEM-resident
            pl.BlockSpec((1, H), lambda i: (0, 0)),    # b1: VMEM-resident
            pl.BlockSpec((H, C), lambda i: (0, 0)),    # W2: VMEM-resident
            pl.BlockSpec((1, C), lambda i: (0, 0)),    # b2: VMEM-resident
        ],
        out_specs=pl.BlockSpec((TB, C), lambda i: (i, 0)),
        compiler_params=pltpu.CompilerParams(
            dimension_semantics=("parallel",),  # batch axis is embarrassingly parallel
        ),
    )(x_in, w1, b1, w2, b2)

    return out[:B] if Bp != B else out


def _ref_forward(x, w1, b1, w2, b2):
    return jnp.maximum(x @ w1 + b1, 0.0) @ w2 + b2


if __name__ == "__main__":
    input_dim, hidden, num_classes = 32, 16, 4

    key = jax.random.PRNGKey(0)
    kx, k1, k2, k3, k4, kx2 = jax.random.split(key, 6)

    # Deterministic parameter init (shapes from nn.Linear(input_dim,16) /
    # nn.Linear(16,num_classes)), stored pre-transposed as (in, out).
    bound1 = 1.0 / jnp.sqrt(input_dim)
    w1 = jax.random.uniform(k1, (input_dim, hidden), jnp.float32, -bound1, bound1)
    b1 = jax.random.uniform(k2, (1, hidden), jnp.float32, -bound1, bound1)
    bound2 = 1.0 / jnp.sqrt(hidden)
    w2 = jax.random.uniform(k3, (hidden, num_classes), jnp.float32, -bound2, bound2)
    b2 = jax.random.uniform(k4, (1, num_classes), jnp.float32, -bound2, bound2)

    # Case 1: tiny batch (batch=2) — exercises the pad-to-sublane path.
    batch = 2
    x = jax.random.normal(kx, (batch, input_dim), dtype=jnp.float32)
    out = simple_classifier(x, w1, b1, w2, b2)
    jax.block_until_ready(out)
    ref = _ref_forward(x, w1, b1, w2, b2)
    assert out.shape == (batch, num_classes)
    assert jnp.allclose(out, ref, atol=1e-5, rtol=1e-5)

    # Case 2: multi-tile ragged batch (600 = 512 + 88) — exercises the batch
    # grid, resident weights, and the ragged-tail padding/slicing.
    batch2 = 600
    x2 = jax.random.normal(kx2, (batch2, input_dim), dtype=jnp.float32)
    out2 = simple_classifier(x2, w1, b1, w2, b2)
    jax.block_until_ready(out2)
    ref2 = _ref_forward(x2, w1, b1, w2, b2)
    assert out2.shape == (batch2, num_classes)
    assert jnp.allclose(out2, ref2, atol=1e-5, rtol=1e-5)

    print("KERNEL_OK")
</pallas_src>

<mosaic_0001>
module attributes {stable_mosaic.version = 11 : i64} {
  func.func @mlp_kernel(%arg0: i32, %arg1: memref<8x32xf32, #tpu.memory_space<vmem>>, %arg2: memref<32x16xf32, #tpu.memory_space<vmem>>, %arg3: memref<1x16xf32, #tpu.memory_space<vmem>>, %arg4: memref<16x4xf32, #tpu.memory_space<vmem>>, %arg5: memref<1x4xf32, #tpu.memory_space<vmem>>, %arg6: memref<8x4xf32, #tpu.memory_space<vmem>>) attributes {dimension_semantics = [#tpu.dimension_semantics<parallel>], iteration_bounds = array<i64: 1>, scalar_prefetch = 0 : i64, scratch_operands = 0 : i64, tpu.core_type = #tpu.core_type<tc>, window_params = [{transform_indices = @transform_0, window_bounds = array<i64: 8, 32>}, {pipeline_mode = #tpu.pipeline_mode<synchronous>, transform_indices = @transform_1, window_bounds = array<i64: 32, 16>}, {pipeline_mode = #tpu.pipeline_mode<synchronous>, transform_indices = @transform_2, window_bounds = array<i64: 1, 16>}, {pipeline_mode = #tpu.pipeline_mode<synchronous>, transform_indices = @transform_3, window_bounds = array<i64: 16, 4>}, {pipeline_mode = #tpu.pipeline_mode<synchronous>, transform_indices = @transform_4, window_bounds = array<i64: 1, 4>}, {transform_indices = @transform_5, window_bounds = array<i64: 8, 4>}]} {
    %c0 = arith.constant 0 : index
    %c0_0 = arith.constant 0 : index
    %0 = vector.load %arg1[%c0, %c0_0] : memref<8x32xf32, #tpu.memory_space<vmem>>, vector<8x32xf32>
    %c0_1 = arith.constant 0 : index
    %c0_2 = arith.constant 0 : index
    %1 = vector.load %arg2[%c0_1, %c0_2] : memref<32x16xf32, #tpu.memory_space<vmem>>, vector<32x16xf32>
    %cst = arith.constant dense<0.000000e+00> : vector<8x16xf32>
    %2 = tpu.matmul %0, %1, %cst {dimension_numbers = #tpu.dot_dimension_numbers<[1], [0], [0], [1], [0, 0, 1, 1], [], []>} : vector<8x32xf32>, vector<32x16xf32>, vector<8x16xf32> -> vector<8x16xf32>
    %c0_3 = arith.constant 0 : index
    %c0_4 = arith.constant 0 : index
    %3 = vector.load %arg3[%c0_3, %c0_4] : memref<1x16xf32, #tpu.memory_space<vmem>>, vector<1x16xf32>
    %4 = vector.broadcast %3 : vector<1x16xf32> to vector<8x16xf32>
    %5 = arith.addf %2, %4 : vector<8x16xf32>
    %cst_5 = arith.constant 0.000000e+00 : f32
    %6 = vector.broadcast %cst_5 : f32 to vector<8x16xf32>
    %7 = arith.maximumf %5, %6 : vector<8x16xf32>
    %c0_6 = arith.constant 0 : index
    %c0_7 = arith.constant 0 : index
    %8 = vector.load %arg4[%c0_6, %c0_7] : memref<16x4xf32, #tpu.memory_space<vmem>>, vector<16x4xf32>
    %cst_8 = arith.constant dense<0.000000e+00> : vector<8x4xf32>
    %9 = tpu.matmul %7, %8, %cst_8 {dimension_numbers = #tpu.dot_dimension_numbers<[1], [0], [0], [1], [0, 0, 1, 1], [], []>} : vector<8x16xf32>, vector<16x4xf32>, vector<8x4xf32> -> vector<8x4xf32>
    %c0_9 = arith.constant 0 : index
    %c0_10 = arith.constant 0 : index
    %10 = vector.load %arg5[%c0_9, %c0_10] : memref<1x4xf32, #tpu.memory_space<vmem>>, vector<1x4xf32>
    %11 = vector.broadcast %10 : vector<1x4xf32> to vector<8x4xf32>
    %12 = arith.addf %9, %11 : vector<8x4xf32>
    %c0_11 = arith.constant 0 : index
    %c0_12 = arith.constant 0 : index
    %13 = vector.load %arg6[%c0_11, %c0_12] : memref<8x4xf32, #tpu.memory_space<vmem>>, vector<8x4xf32>
    tpu.vector_store %arg6[%c0_11, %c0_12], %12 {strides = array<i32>} : memref<8x4xf32, #tpu.memory_space<vmem>>, vector<8x4xf32>,
    return
  }
  func.func @transform_0(%arg0: i32) -> (i32, i32) {
    %c0_i32 = arith.constant 0 : i32
    %c0_i32_0 = arith.constant 0 : i32
    return %arg0, %c0_i32 : i32, i32
  }
  func.func @transform_1(%arg0: i32) -> (i32, i32) {
    %c0_i32 = arith.constant 0 : i32
    %c0_i32_0 = arith.constant 0 : i32
    %c0_i32_1 = arith.constant 0 : i32
    return %c0_i32, %c0_i32_0 : i32, i32
  }
  func.func @transform_2(%arg0: i32) -> (i32, i32) {
    %c0_i32 = arith.constant 0 : i32
    %c0_i32_0 = arith.constant 0 : i32
    %c0_i32_1 = arith.constant 0 : i32
    return %c0_i32, %c0_i32_0 : i32, i32
  }
  func.func @transform_3(%arg0: i32) -> (i32, i32) {
    %c0_i32 = arith.constant 0 : i32
    %c0_i32_0 = arith.constant 0 : i32
    %c0_i32_1 = arith.constant 0 : i32
    return %c0_i32, %c0_i32_0 : i32, i32
  }
  func.func @transform_4(%arg0: i32) -> (i32, i32) {
    %c0_i32 = arith.constant 0 : i32
    %c0_i32_0 = arith.constant 0 : i32
    %c0_i32_1 = arith.constant 0 : i32
    return %c0_i32, %c0_i32_0 : i32, i32
  }
  func.func @transform_5(%arg0: i32) -> (i32, i32) {
    %c0_i32 = arith.constant 0 : i32
    %c0_i32_0 = arith.constant 0 : i32
    return %arg0, %c0_i32 : i32, i32
  }
}

</mosaic_0001>

<bundles_post_ra>
// kernel: tpu_custom_call.1
= control target key start
LH: loop header
LB: loop body
LE: loop exit
PB: predicated region body
PF: predicated region fallthrough
CT: control target
= control target key end

     0   :  { %vm29_vm0 = vcmask 261120   ;;  %vm60_vm1 = vcmask 130048   ;;  %vm84_vm2 = vcmask 31744   ;;  %s154_s1 = inlined_call_operand.vmem [shape: f32[32,16], index: 1, kind: input, shape index: {}]   ;;  %s155_s2 = inlined_call_operand.vmem [shape: f32[1,16], index: 2, kind: input, shape index: {}]   ;;  %s156_s0 = inlined_call_operand.vmem [shape: f32[8,32], index: 0, kind: input, shape index: {}]   ;;  %s157_s4 = inlined_call_operand.vmem [shape: f32[1,4], index: 4, kind: input, shape index: {}]   ;;  %s158_s3 = inlined_call_operand.vmem [shape: f32[16,4], index: 3, kind: input, shape index: {}]   ;;  %s159_s5 = inlined_call_operand.vmem [shape: f32[8,4], index: 5, kind: output, shape index: {}]  }
   0x1   :  { %v24_v0 = vld [vmem:[%s154_s1 + $0x18] sm:$0xff]  ;;  %v23_v1 = vld [vmem:[%s154_s1 + $0x10] sm:$0xff]  ;;  %v22_v2 = vld [vmem:[%s154_s1 + $0x8] sm:$0xff] }
   0x2   :  { %45 = vmatpush.msra.mxu0 %v24_v0  ;;  %v21_v3 = vld [vmem:[%s154_s1] sm:$0xff]  ;;  %v55_v5 = vld [vmem:[%s158_s3 + $0x8] sm:$0xff] }
   0x3   :  { %v20_v4 = vld [vmem:[%s156_s0] sm:$0xff]  ;;  %78 = vmatpush.msra.mxu1 %v55_v5 }
   0x4   :  { %46 = vmatpush.msra.mxu0 %v23_v1  ;;  %v54_v6 = vld [vmem:[%s158_s3] sm:$0xff] }
   0x5   :  { %79 = vmatpush.msra.mxu1 %v54_v6  ;;  %v92_v7 = vld [vmem:[%s155_s2] ss:$0 sm:$0xff] }
   0x6   :  { %47 = vmatpush.msra.mxu0 %v22_v2  ;;  %v93_v11 = vld [vmem:[%s157_s4] ss:$0 sm:$0xff] }
   0x8   :  { %48 = vmatpush.msra.mxu0 %v21_v3 }
   0x9   :  { %90 = vmatmul.msk.f32.vlgmr.msra.gmra.mxu0 %vm29_vm0, %v20_v4 }
  0x86   :  { %v50_v8 = vpop.f32.mrf.mxu0 }
  0x87   :  { %v51_v9 = vadd.f32 %v92_v7, %v50_v8 }
  0x89   :  { %v53_v10 = vmax.f32 %v51_v9, 0.0 }
  0x8b   :  { %91 = vmatmul.msk.f32.vlgmr.msra.gmra.mxu1 %vm60_vm1, %v53_v10 }
 0x108   :  { %v81_v12 = vpop.f32.mrf.mxu1 }
 0x109   :  { %v82_v13 = vadd.f32 %v93_v11, %v81_v12 }
 0x10b   :  { %85 = vst.msk [vmem:[%s159_s5] sm:$0xff] %vm84_vm2, %v82_v13 }

</bundles_post_ra>
